<compile_context>
chip_gen: v7x
topology: tpu7x:2x2x1
jax: 0.10.0
libtpu: 0.0.40
codegen_flags: <defaults>
</compile_context>

<pallas_src>
import functools

import jax
import jax.numpy as jnp
from jax import lax
from jax.experimental import pallas as pl
from jax.experimental.pallas import tpu as pltpu

_LABEL_SENTINEL = jnp.iinfo(jnp.int32).min  # impossible class label for padded columns


def _round_up(x, k):
    return (x + k - 1) // k * k


def _choose_tile_n(n, m_pad):
    # tile_n = 256 when the (tile_n, m_pad) f32 temporaries stay small, else 128.
    tile = 256 if m_pad * 256 * 4 * 4 <= 8 * 1024 * 1024 else 128
    tile = min(tile, _round_up(max(n, 1), 8))
    # Shrink so the grid has >= 2 steps whenever n allows it (megacore sharding on v7x).
    while tile > 8 and _round_up(n, tile) // tile < 2:
        tile = _round_up(tile // 2, 8)
    return max(tile, 8)


def _vmem_limit_bytes(tile_n, d_pad, m_pad):
    f32 = 4
    need = (2 * tile_n * d_pad * f32          # inputs_col tile, double-buffered
            + 2 * tile_n * 128 * f32          # targets_col tile (lane-padded)
            + 1 * d_pad * m_pad * f32         # resident inputs_row.T (Buffered(1))
            + 1 * 8 * m_pad * f32             # resident targets_row (sublane-padded)
            + 2 * tile_n * 128 * f32          # output tile
            + 6 * tile_n * m_pad * f32)       # sim / mask / select temporaries
    need = int(need * 1.25) + (1 << 20)       # 25% slack + 1 MiB
    try:
        cap = pltpu.get_tpu_info().vmem_capacity_bytes
    except Exception:
        cap = 64 * 1024 * 1024                # conservative fallback (v7x per-TC size)
    return min(max(need, 16 * 1024 * 1024), cap * 3 // 4)


def _triplet_loss_kernel(col_ref, tcol_ref, rowT_ref, trow_ref, out_ref,
                         *, margin, tile_n, m_pad, n_real, m_real):
    # Global row offset of this tile (needed for correct diagonal removal & row masking).
    row0 = pl.program_id(0) * tile_n

    # sim = inputs_col_tile @ inputs_row.T  -> f32 on the MXU (not the bottleneck).
    sim = jnp.dot(col_ref[...], rowT_ref[...],
                  preferred_element_type=jnp.float32,
                  precision=lax.Precision.HIGHEST)             # (tile_n, m_pad)

    tc = tcol_ref[...]                                         # (tile_n, 1) i32
    tr = trow_ref[...]                                         # (1, m_pad) i32 (pad = sentinel)

    col_ids = lax.broadcasted_iota(jnp.int32, (1, m_pad), 1)   # (1, m_pad)
    row_ids = lax.broadcasted_iota(jnp.int32, (tile_n, 1), 0) + row0  # global row ids

    same = tc == tr                    # sentinel-padded columns are never "same"
    not_diag = col_ids != row_ids
    col_valid = col_ids < m_real       # (1, m_pad) broadcast; only needed on the neg mask

    pos = jnp.logical_and(same, not_diag)
    neg = jnp.logical_and(jnp.logical_not(same), col_valid)

    ninf = jnp.float32(-jnp.inf)
    sim_neg = jnp.where(neg, sim, ninf)                        # reused below
    sim_pos = jnp.where(pos, sim, ninf)
    max_neg = jnp.max(sim_neg, axis=1, keepdims=True)          # (tile_n, 1)
    max_pos = jnp.max(sim_pos, axis=1, keepdims=True)          # (tile_n, 1)

    margin_f = jnp.float32(margin)
    # pos pairs with sim < max_neg + margin contribute (1 - sim)
    pos_thr = max_neg + margin_f
    # neg pairs with sim > max(0.6, max_pos) - margin contribute sim
    neg_thr = jnp.maximum(jnp.float32(0.6), max_pos) - margin_f

    pos_sel = jnp.logical_and(pos, sim < pos_thr)
    # pos_sel and (sim_neg > neg_thr) are disjoint -> single fused row reduction.
    contrib = (jnp.where(pos_sel, 1.0 - sim, 0.0)
               + jnp.where(sim_neg > neg_thr, sim_neg, 0.0))
    row_loss = jnp.sum(contrib, axis=1, keepdims=True)         # (tile_n, 1)

    # Rows without any positive pair contribute 0; padded rows contribute 0.
    # TODO(synk): rows that have positives but zero negatives would raise in the PyTorch
    #             loop (neg_pair_[-1] of an empty tensor); here they contribute 0.
    has_pos = max_pos > ninf
    row_valid = row_ids < n_real
    out_ref[...] = jnp.where(jnp.logical_and(has_pos, row_valid), row_loss, 0.0)


def _prepare_row_bank(inputs_row, targets_row):
    """Pre-transposed, padded row bank. Hoist/cache this across calls when the
    (inputs_row, targets_row) memory bank is reused."""
    m, d = inputs_row.shape
    m_pad = _round_up(m, 128)
    d_pad = _round_up(d, 128)
    rowT = jnp.pad(inputs_row.astype(jnp.float32).T,
                   ((0, d_pad - d), (0, m_pad - m)))
    tr = jnp.pad(targets_row.astype(jnp.int32).reshape(1, m),
                 ((0, 0), (0, m_pad - m)), constant_values=_LABEL_SENTINEL)
    return rowT, tr


def triplet_loss(inputs_col, targets_col, inputs_row, targets_row, margin=0.1):
    n, d = inputs_col.shape
    m, d2 = inputs_row.shape
    assert d == d2

    rowT, tr = _prepare_row_bank(inputs_row, targets_row)
    d_pad, m_pad = rowT.shape

    tile_n = _choose_tile_n(n, m_pad)
    n_pad = _round_up(n, tile_n)

    col = jnp.pad(inputs_col.astype(jnp.float32),
                  ((0, n_pad - n), (0, d_pad - d)))
    tc = jnp.pad(targets_col.astype(jnp.int32).reshape(n, 1),
                 ((0, n_pad - n), (0, 0)))

    kernel = functools.partial(
        _triplet_loss_kernel, margin=float(margin), tile_n=tile_n,
        m_pad=m_pad, n_real=n, m_real=m)

    per_row = pl.pallas_call(
        kernel,
        out_shape=jax.ShapeDtypeStruct((n_pad, 1), jnp.float32),
        grid=(n_pad // tile_n,),
        in_specs=[
            pl.BlockSpec((tile_n, d_pad), lambda i: (i, 0)),     # inputs_col tile
            pl.BlockSpec((tile_n, 1), lambda i: (i, 0)),         # targets_col tile
            pl.BlockSpec((d_pad, m_pad), lambda i: (0, 0),
                         pipeline_mode=pl.Buffered(1)),          # inputs_row.T (resident)
            pl.BlockSpec((1, m_pad), lambda i: (0, 0),
                         pipeline_mode=pl.Buffered(1)),          # targets_row (resident)
        ],
        out_specs=pl.BlockSpec((tile_n, 1), lambda i: (i, 0)),
        compiler_params=pltpu.CompilerParams(
            dimension_semantics=("parallel",),
            vmem_limit_bytes=_vmem_limit_bytes(tile_n, d_pad, m_pad),
        ),
    )(col, tc, rowT, tr)

    # Padded rows wrote exactly 0, so a plain sum is correct; divide by the real n.
    return jnp.sum(per_row) / jnp.float32(n)


if __name__ == "__main__":
    key = jax.random.PRNGKey(0)
    k1, k2, k3, k4 = jax.random.split(key, 4)

    n, m, d = 8, 16, 32  # n column embeddings, m row embeddings, feature dim d

    inputs_col = jax.random.normal(k1, (n, d), dtype=jnp.float32)
    inputs_row = jax.random.normal(k2, (m, d), dtype=jnp.float32)
    # L2-normalize so similarities look like cosine sims (as the loss expects)
    inputs_col = inputs_col / jnp.linalg.norm(inputs_col, axis=1, keepdims=True)
    inputs_row = inputs_row / jnp.linalg.norm(inputs_row, axis=1, keepdims=True)

    targets_col = jax.random.randint(k3, (n,), 0, 4, dtype=jnp.int32)
    targets_row = jax.random.randint(k4, (m,), 0, 4, dtype=jnp.int32)

    loss = triplet_loss(inputs_col, targets_col, inputs_row, targets_row, margin=0.1)
    jax.block_until_ready(loss)
    print("KERNEL_OK")
</pallas_src>

<mosaic_0001>
module attributes {stable_mosaic.version = 11 : i64} {
  func.func @_triplet_loss_kernel(%arg0: i32, %arg1: memref<8x128xf32, #tpu.memory_space<vmem>>, %arg2: memref<8x1xi32, #tpu.memory_space<vmem>>, %arg3: memref<128x128xf32, #tpu.memory_space<vmem>>, %arg4: memref<1x128xi32, #tpu.memory_space<vmem>>, %arg5: memref<8x1xf32, #tpu.memory_space<vmem>>) attributes {dimension_semantics = [#tpu.dimension_semantics<parallel>], iteration_bounds = array<i64: 1>, scalar_prefetch = 0 : i64, scratch_operands = 0 : i64, tpu.core_type = #tpu.core_type<tc>, window_params = [{transform_indices = @transform_0, window_bounds = array<i64: 8, 128>}, {transform_indices = @transform_1, window_bounds = array<i64: 8, 1>}, {pipeline_mode = #tpu.pipeline_mode<synchronous>, transform_indices = @transform_2, window_bounds = array<i64: 128, 128>}, {pipeline_mode = #tpu.pipeline_mode<synchronous>, transform_indices = @transform_3, window_bounds = array<i64: 1, 128>}, {transform_indices = @transform_4, window_bounds = array<i64: 8, 1>}]} {
    %c8_i32 = arith.constant 8 : i32
    %0 = arith.muli %arg0, %c8_i32 : i32
    %c0 = arith.constant 0 : index
    %c0_0 = arith.constant 0 : index
    %1 = vector.load %arg1[%c0, %c0_0] : memref<8x128xf32, #tpu.memory_space<vmem>>, vector<8x128xf32>
    %c0_1 = arith.constant 0 : index
    %c0_2 = arith.constant 0 : index
    %2 = vector.load %arg3[%c0_1, %c0_2] : memref<128x128xf32, #tpu.memory_space<vmem>>, vector<128x128xf32>
    %cst = arith.constant dense<0.000000e+00> : vector<8x128xf32>
    %3 = tpu.matmul %1, %2, %cst {dimension_numbers = #tpu.dot_dimension_numbers<[1], [0], [0], [1], [0, 0, 1, 1], [], []>, precision = #tpu.contract_precision<fp32>} : vector<8x128xf32>, vector<128x128xf32>, vector<8x128xf32> -> vector<8x128xf32>
    %c0_3 = arith.constant 0 : index
    %c0_4 = arith.constant 0 : index
    %4 = vector.load %arg2[%c0_3, %c0_4] : memref<8x1xi32, #tpu.memory_space<vmem>>, vector<8x1xi32>
    %c0_5 = arith.constant 0 : index
    %c0_6 = arith.constant 0 : index
    %5 = vector.load %arg4[%c0_5, %c0_6] : memref<1x128xi32, #tpu.memory_space<vmem>>, vector<1x128xi32>
    %6 = tpu.iota {dimensions = array<i32: 1>} : vector<1x128xi32>
    %7 = tpu.iota {dimensions = array<i32: 0>} : vector<8x1xi32>
    %8 = vector.broadcast %0 : i32 to vector<8x1xi32>
    %9 = arith.addi %7, %8 : vector<8x1xi32>
    %10 = vector.broadcast %4 : vector<8x1xi32> to vector<8x128xi32>
    %11 = vector.broadcast %5 : vector<1x128xi32> to vector<8x128xi32>
    %12 = arith.cmpi eq, %10, %11 : vector<8x128xi32>
    %13 = vector.broadcast %6 : vector<1x128xi32> to vector<8x128xi32>
    %14 = vector.broadcast %9 : vector<8x1xi32> to vector<8x128xi32>
    %15 = arith.cmpi ne, %13, %14 : vector<8x128xi32>
    %c16_i32 = arith.constant 16 : i32
    %16 = vector.broadcast %c16_i32 : i32 to vector<1x128xi32>
    %17 = arith.cmpi slt, %6, %16 : vector<1x128xi32>
    %18 = arith.andi %12, %15 : vector<8x128xi1>
    %cst_7 = arith.constant dense<true> : vector<8x128xi1>
    %19 = arith.xori %12, %cst_7 : vector<8x128xi1>
    %20 = vector.broadcast %17 : vector<1x128xi1> to vector<8x128xi1>
    %21 = arith.andi %19, %20 : vector<8x128xi1>
    %cst_8 = arith.constant 0xFF800000 : f32
    %22 = vector.broadcast %cst_8 : f32 to vector<8x128xf32>
    %23 = arith.select %21, %3, %22 : vector<8x128xi1>, vector<8x128xf32>
    %cst_9 = arith.constant 0xFF800000 : f32
    %24 = vector.broadcast %cst_9 : f32 to vector<8x128xf32>
    %25 = arith.select %18, %3, %24 : vector<8x128xi1>, vector<8x128xf32>
    %cst_10 = arith.constant dense<0xFF800000> : vector<8xf32>
    %26 = vector.multi_reduction <maximumf>, %23, %cst_10 [1] : vector<8x128xf32> to vector<8xf32>
    %27 = vector.shape_cast %26 : vector<8xf32> to vector<8x1xf32>
    %cst_11 = arith.constant dense<0xFF800000> : vector<8xf32>
    %28 = vector.multi_reduction <maximumf>, %25, %cst_11 [1] : vector<8x128xf32> to vector<8xf32>
    %29 = vector.shape_cast %28 : vector<8xf32> to vector<8x1xf32>
    %cst_12 = arith.constant 1.000000e-01 : f32
    %30 = vector.broadcast %cst_12 : f32 to vector<8x1xf32>
    %31 = arith.addf %27, %30 : vector<8x1xf32>
    %cst_13 = arith.constant 6.000000e-01 : f32
    %32 = vector.broadcast %cst_13 : f32 to vector<8x1xf32>
    %33 = arith.maximumf %32, %29 : vector<8x1xf32>
    %cst_14 = arith.constant 1.000000e-01 : f32
    %34 = vector.broadcast %cst_14 : f32 to vector<8x1xf32>
    %35 = arith.subf %33, %34 : vector<8x1xf32>
    %36 = vector.broadcast %31 : vector<8x1xf32> to vector<8x128xf32>
    %37 = arith.cmpf olt, %3, %36 : vector<8x128xf32>
    %38 = arith.andi %18, %37 : vector<8x128xi1>
    %cst_15 = arith.constant 1.000000e+00 : f32
    %39 = vector.broadcast %cst_15 : f32 to vector<8x128xf32>
    %40 = arith.subf %39, %3 : vector<8x128xf32>
    %cst_16 = arith.constant 0.000000e+00 : f32
    %41 = vector.broadcast %cst_16 : f32 to vector<8x128xf32>
    %42 = arith.select %38, %40, %41 : vector<8x128xi1>, vector<8x128xf32>
    %43 = vector.broadcast %35 : vector<8x1xf32> to vector<8x128xf32>
    %44 = arith.cmpf ogt, %23, %43 : vector<8x128xf32>
    %cst_17 = arith.constant 0.000000e+00 : f32
    %45 = vector.broadcast %cst_17 : f32 to vector<8x128xf32>
    %46 = arith.select %44, %23, %45 : vector<8x128xi1>, vector<8x128xf32>
    %47 = arith.addf %42, %46 : vector<8x128xf32>
    %cst_18 = arith.constant dense<0.000000e+00> : vector<8xf32>
    %48 = vector.multi_reduction <add>, %47, %cst_18 [1] : vector<8x128xf32> to vector<8xf32>
    %49 = vector.shape_cast %48 : vector<8xf32> to vector<8x1xf32>
    %cst_19 = arith.constant 0xFF800000 : f32
    %50 = vector.broadcast %cst_19 : f32 to vector<8x1xf32>
    %51 = arith.cmpf ogt, %29, %50 : vector<8x1xf32>
    %c8_i32_20 = arith.constant 8 : i32
    %52 = vector.broadcast %c8_i32_20 : i32 to vector<8x1xi32>
    %53 = arith.cmpi slt, %9, %52 : vector<8x1xi32>
    %54 = arith.andi %51, %53 : vector<8x1xi1>
    %cst_21 = arith.constant 0.000000e+00 : f32
    %55 = vector.broadcast %cst_21 : f32 to vector<8x1xf32>
    %56 = arith.select %54, %49, %55 : vector<8x1xi1>, vector<8x1xf32>
    %c0_22 = arith.constant 0 : index
    %c0_23 = arith.constant 0 : index
    %57 = vector.load %arg5[%c0_22, %c0_23] : memref<8x1xf32, #tpu.memory_space<vmem>>, vector<8x1xf32>
    tpu.vector_store %arg5[%c0_22, %c0_23], %56 {strides = array<i32>} : memref<8x1xf32, #tpu.memory_space<vmem>>, vector<8x1xf32>,
    return
  }
  func.func @transform_0(%arg0: i32) -> (i32, i32) {
    %c0_i32 = arith.constant 0 : i32
    %c0_i32_0 = arith.constant 0 : i32
    return %arg0, %c0_i32 : i32, i32
  }
  func.func @transform_1(%arg0: i32) -> (i32, i32) {
    %c0_i32 = arith.constant 0 : i32
    %c0_i32_0 = arith.constant 0 : i32
    return %arg0, %c0_i32 : i32, i32
  }
  func.func @transform_2(%arg0: i32) -> (i32, i32) {
    %c0_i32 = arith.constant 0 : i32
    %c0_i32_0 = arith.constant 0 : i32
    %c0_i32_1 = arith.constant 0 : i32
    return %c0_i32, %c0_i32_0 : i32, i32
  }
  func.func @transform_3(%arg0: i32) -> (i32, i32) {
    %c0_i32 = arith.constant 0 : i32
    %c0_i32_0 = arith.constant 0 : i32
    %c0_i32_1 = arith.constant 0 : i32
    return %c0_i32, %c0_i32_0 : i32, i32
  }
  func.func @transform_4(%arg0: i32) -> (i32, i32) {
    %c0_i32 = arith.constant 0 : i32
    %c0_i32_0 = arith.constant 0 : i32
    return %arg0, %c0_i32 : i32, i32
  }
}

</mosaic_0001>

<bundles_post_ra>
// kernel: tpu_custom_call.1
= control target key start
LH: loop header
LB: loop body
LE: loop exit
PB: predicated region body
PF: predicated region fallthrough
CT: control target
= control target key end

     0   :  { %9 = vsyncpa [#allocation3], 0  ;;  %s1242_s15 = smov [#allocation2]   ;;  %s1554_s0 = inlined_call_operand.vmem [shape: f32[8,128], index: 0, kind: input, shape index: {}]   ;;  %s1555_s1 = inlined_call_operand.vmem [shape: s32[8,1], index: 1, kind: input, shape index: {}]   ;;  %s1556_s2 = inlined_call_operand.hbm [shape: f32[128,128], index: 2, kind: input, shape index: {}]   ;;  %s1557_s3 = inlined_call_operand.vmem [shape: s32[1,128], index: 3, kind: input, shape index: {}]   ;;  %s1558_s4 = inlined_call_operand.vmem [shape: f32[8,1], index: 4, kind: output, shape index: {}]  }
   0x1   :  { %s19_s16 = sshll.u32 %s1242_s15, 4  ;;  %s1218_s19 = scalar_lea.hbm %s1556_s2, 2048  ;;  %s20_s16 = int_to_ptr.vmem [resolvable:$true] %s19_s16 }
   0x2   :  { %p1219_p0 = scmp.ne.s32.totalorder %s1556_s2, %s1218_s19  ;;  %p1222_p1 = scmp.lt.u32.totalorder %s1218_s19, %s1556_s2 }
   0x4   :  { %p1224_p2 = pnand %p1222_p1, %p1219_p0 }
   0x6   :  { %1227 = shalt.err (!%p1224_p2)
}
   0x7   :  { %s1228_s24 = scalar_lea.vmem %s20_s16, 2048  ;;  %p1233_p4 = scmp.lt.s32.totalorder %s20_s16, %s20_s16 }
   0x8   :  { %p1229_p3 = scmp.ne.s32.totalorder %s20_s16, %s1228_s24  ;;  %p1234_p5 = scmp.lt.s32.totalorder %s1228_s24, %s1228_s24 }
   0xa   :  { %p1235_p6 = por %p1234_p5, %p1233_p4 }
   0xc   :  { %p1236_p7 = pnand %p1235_p6, %p1229_p3 }
   0xe   :  { %1239 = shalt.err (!%p1236_p7)
}
   0xf   :  { %s1243_s25 = smov 128   ;;  %s1244_s26 = smov 8  }
  0x10   :  { %25 = dma.hbm_to_vmem [thread:$0]  %s1556_s2, 2048, %s20_s16, [#allocation3], %s1243_s25, %s1243_s25, %s1244_s26  }
  0x11   :  { %1240 = dma.done.wait [#allocation3], 2048  }
  0x12   :  { %1241 = vsyncadd [#allocation3], 4294965248  ;;  %v1245_v0 = vmov 0.0|0.0   ;;  %vm1246_vm0 = vmmov 0   ;;  %v1247_v1 = vmov 0.0   ;;  %v1248_v2 = vmov 0  }
  0x13   :  { %1056 = vmatprep.subr.bf16.mxu1 %v1245_v0  ;;  %1128 = vmatprep.subr.bf16.mxu0 %v1245_v0  ;;  %v33_v3 = vld [vmem:[#allocation2] sm:$0xff]  ;;  %v34_v4 = vld [vmem:[#allocation2 + $0x8] sm:$0xff]  ;;  %v35_v5 = vld [vmem:[#allocation2 + $0x10] sm:$0xff]  ;;  %vm1249_vm3 = vmmov 1   ;;  %vm735_vm11 = vcmask 7168  }
  0x14   :  { %878 = vmatprep.mubr.msk.f32.mxu1 %vm1246_vm0, %v1247_v1  ;;  %983 = vmatprep.mubr.msk.f32.mxu0 %vm1246_vm0, %v1247_v1  ;;  %v50_v6 = vand.u32 4294901760, %v33_v3  ;;  %v53_v7 = vand.u32 4294901760, %v34_v4  ;;  %v36_v8 = vld [vmem:[#allocation2 + $0x18] sm:$0xff]  ;;  %v56_v9 = vand.u32 4294901760, %v35_v5  ;;  %v37_v11 = vld [vmem:[#allocation2 + $0x20] sm:$0xff]  ;;  %v38_v12 = vld [vmem:[#allocation2 + $0x28] sm:$0xff] }
  0x15   :  { %1217 = vset.pattern.permute.xlu0 %v1248_v2  ;;  %v59_v10 = vand.u32 4294901760, %v36_v8  ;;  %v62_v15 = vand.u32 4294901760, %v37_v11  ;;  %v65_v16 = vand.u32 4294901760, %v38_v12  ;;  %v690_v17 = vld [vmem:[%s1555_s1] sm:$0xff]  ;;  %v39_v18 = vld [vmem:[#allocation2 + $0x30] sm:$0xff]  ;;  %v40_v19 = vld [vmem:[#allocation2 + $0x38] sm:$0xff] }
  0x16   :  { %v1293_v13 = vpack.c.bf16 %v53_v7, %v50_v6  ;;  %699 = vperm.xlu0 %1217, %v690_v17   ;;  %v68_v21 = vand.u32 4294901760, %v39_v18  ;;  %v71_v22 = vand.u32 4294901760, %v40_v19  ;;  %v1310_v23 = vld [vmem:[#allocation2 + $0x40] sm:$0xff]  ;;  %v1312_v24 = vld [vmem:[#allocation2 + $0x48] sm:$0xff]  ;;  %v1325_v29 = vld [vmem:[#allocation2 + $0x50] sm:$0xff]  ;;  %v1329_v31 = vsub.f32 %v33_v3, %v50_v6 }
  0x17   :  { %v1297_v14 = vpack.c.bf16 %v59_v10, %v56_v9  ;;  %v1306_v20 = vpack.c.bf16 %v65_v16, %v62_v15  ;;  %v74_v26 = vand.u32 4294901760, %v1310_v23  ;;  %v77_v27 = vand.u32 4294901760, %v1312_v24  ;;  %v32_v28 = vld [vmem:[%s1554_s0] sm:$0xff]  ;;  %v1327_v30 = vld [vmem:[#allocation2 + $0x58] sm:$0xff]  ;;  %v1345_v38 = vld [vmem:[#allocation2 + $0x68] sm:$0xff] }
  0x18   :  { %1058 = vmatpush3.bf16.msra.mxu1 %v1293_v13  ;;  %1130 = vmatpush3.bf16.msra.mxu0 %v1293_v13  ;;  %v1316_v25 = vpack.c.bf16 %v71_v22, %v68_v21  ;;  %v1331_v32 = vand.u32 4294901760, %v32_v28  ;;  %v1333_v33 = vsub.f32 %v34_v4, %v53_v7  ;;  %v80_v35 = vand.u32 4294901760, %v1325_v29  ;;  %v1341_v37 = vld [vmem:[#allocation2 + $0x60] sm:$0xff]  ;;  %v1364_v45 = vld [vmem:[#allocation2 + $0x70] sm:$0xff]  ;;  %v1366_v46 = vld [vmem:[#allocation2 + $0x78] sm:$0xff] }
  0x19   :  { %1059 = vmatprep.subr.bf16.mxu1 %v1245_v0  ;;  %1131 = vmatprep.subr.bf16.mxu0 %v1245_v0  ;;  %v1337_v34 = vpack.c.bf16 %v77_v27, %v74_v26  ;;  %v83_v36 = vand.u32 4294901760, %v1327_v30  ;;  %v1347_v39 = vsub.f32 %v35_v5, %v56_v9  ;;  %v1349_v40 = vsub.f32 %v36_v8, %v59_v10 }
  0x1a   :  { %v86_v41 = vand.u32 4294901760, %v1341_v37  ;;  %v1353_v42 = vsub.f32 %v32_v28, %v1331_v32  ;;  %v89_v44 = vand.u32 4294901760, %v1345_v38  ;;  %v143_v47 = vand.u32 4294901760, %v1329_v31 }
  0x1b   :  { %v1361_v43 = vpack.c.bf16 %v83_v36, %v80_v35  ;;  %v150_v48 = vand.u32 4294901760, %v1333_v33  ;;  %v1372_v49 = vsub.f32 %v37_v11, %v62_v15  ;;  %v1374_v50 = vsub.f32 %v38_v12, %v65_v16 }
  0x1c   :  { %1061 = vmatpush3.bf16.msra.mxu1 %v1297_v14  ;;  %1133 = vmatpush3.bf16.msra.mxu0 %v1297_v14  ;;  %v92_v51 = vand.u32 4294901760, %v1364_v45  ;;  %v95_v52 = vand.u32 4294901760, %v1366_v46  ;;  %v132_v53 = vand.u32 4294901760, %v1353_v42  ;;  %v157_v54 = vand.u32 4294901760, %v1347_v39 }
  0x1d   :  { %1062 = vmatprep.subr.bf16.mxu1 %v1245_v0  ;;  %1134 = vmatprep.subr.bf16.mxu0 %v1245_v0  ;;  %v1386_v55 = vpack.c.bf16 %v89_v44, %v86_v41  ;;  %v144_v56 = vsub.f32 %v1329_v31, %v143_v47  ;;  %v151_v57 = vsub.f32 %v1333_v33, %v150_v48  ;;  %v164_v58 = vand.u32 4294901760, %v1349_v40 }
  0x1e   :  { %v1393_v59 = vsub.f32 %v39_v18, %v68_v21  ;;  %v1395_v60 = vsub.f32 %v40_v19, %v71_v22  ;;  %v133_v61 = vsub.f32 %v1353_v42, %v132_v53  ;;  %v158_v62 = vsub.f32 %v1347_v39, %v157_v54 }
  0x1f   :  { %v171_v63 = vand.u32 4294901760, %v1372_v49  ;;  %v178_v2 = vand.u32 4294901760, %v1374_v50  ;;  %v1407_v3 = vpack.c.bf16 %v95_v52, %v92_v51  ;;  %v145_v4 = vand.u32 4294901760, %v144_v56 }
  0x20   :  { %1064 = vmatpush3.bf16.msra.mxu1 %v1306_v20  ;;  %1136 = vmatpush3.bf16.msra.mxu0 %v1306_v20  ;;  %v152_v5 = vand.u32 4294901760, %v151_v57  ;;  %v165_v6 = vsub.f32 %v1349_v40, %v164_v58  ;;  %v1413_v7 = vsub.f32 %v1310_v23, %v74_v26  ;;  %v1416_v8 = vsub.f32 %v1312_v24, %v77_v27 }
  0x21   :  { %1065 = vmatprep.subr.bf16.mxu1 %v1245_v0  ;;  %1137 = vmatprep.subr.bf16.mxu0 %v1245_v0  ;;  %v1153_v9 = vpack.c.bf16 %v150_v48, %v143_v47  ;;  %v134_v10 = vand.u32 4294901760, %v133_v61  ;;  %v159_v11 = vand.u32 4294901760, %v158_v62  ;;  %v172_v12 = vsub.f32 %v1372_v49, %v171_v63 }
  0x22   :  { %v179_v15 = vsub.f32 %v1374_v50, %v178_v2  ;;  %v1081_v16 = vpack.c.bf16 %v152_v5, %v145_v4  ;;  %v166_v17 = vand.u32 4294901760, %v165_v6  ;;  %v185_v18 = vand.u32 4294901760, %v1393_v59 }
  0x23   :  { %v192_v19 = vand.u32 4294901760, %v1395_v60  ;;  %v1429_v21 = vsub.f32 %v1325_v29, %v80_v35  ;;  %v1434_v22 = vsub.f32 %v1327_v30, %v83_v36  ;;  %v1156_v23 = vpack.c.bf16 %v164_v58, %v157_v54 }
  0x24   :  { %1067 = vmatpush3.bf16.msra.mxu1 %v1316_v25  ;;  %1139 = vmatpush3.bf16.msra.mxu0 %v1316_v25  ;;  %v173_v24 = vand.u32 4294901760, %v172_v12  ;;  %v180_v26 = vand.u32 4294901760, %v179_v15  ;;  %v199_v27 = vand.u32 4294901760, %v1413_v7  ;;  %v1084_v28 = vpack.c.bf16 %v166_v17, %v159_v11 }
  0x25   :  { %1068 = vmatprep.subr.bf16.mxu1 %v1245_v0  ;;  %1140 = vmatprep.subr.bf16.mxu0 %v1245_v0  ;;  %v186_v47 = vsub.f32 %v1393_v59, %v185_v18  ;;  %v193_v29 = vsub.f32 %v1395_v60, %v192_v19  ;;  %v206_v35 = vand.u32 4294901760, %v1416_v8  ;;  %v1445_v30 = vsub.f32 %v1341_v37, %v86_v41 }
  0x26   :  { %v1450_v36 = vsub.f32 %v1345_v38, %v89_v44  ;;  %v1087_v48 = vpack.c.bf16 %v180_v26, %v173_v24  ;;  %v200_v54 = vsub.f32 %v1413_v7, %v199_v27  ;;  %v213_v56 = vand.u32 4294901760, %v1429_v21 }
  0x27   :  { %v187_v37 = vand.u32 4294901760, %v186_v47  ;;  %v194_v41 = vand.u32 4294901760, %v193_v29  ;;  %v207_v57 = vsub.f32 %v1416_v8, %v206_v35  ;;  %v220_v38 = vand.u32 4294901760, %v1434_v22 }
  0x28   :  { %1070 = vmatpush3.bf16.msra.mxu1 %v1337_v34  ;;  %1142 = vmatpush3.bf16.msra.mxu0 %v1337_v34  ;;  %v1465_v44 = vsub.f32 %v1364_v45, %v92_v51  ;;  %v1470_v58 = vsub.f32 %v1366_v46, %v95_v52  ;;  %v1162_v61 = vpack.c.bf16 %v192_v19, %v185_v18  ;;  %v201_v62 = vand.u32 4294901760, %v200_v54 }
  0x29   :  { %1071 = vmatprep.subr.bf16.mxu1 %v1245_v0  ;;  %1143 = vmatprep.subr.bf16.mxu0 %v1245_v0  ;;  %v1090_v4 = vpack.c.bf16 %v194_v41, %v187_v37  ;;  %v208_v5 = vand.u32 4294901760, %v207_v57  ;;  %v221_v6 = vsub.f32 %v1434_v22, %v220_v38  ;;  %v234_v45 = vand.u32 4294901760, %v1450_v36 }
  0x2a   :  { %v1165_v46 = vpack.c.bf16 %v206_v35, %v199_v27  ;;  %v248_v15 = vand.u32 4294901760, %v1470_v58 }
  0x2b   :  { %v222_v11 = vand.u32 4294901760, %v221_v6  ;;  %v235_v12 = vsub.f32 %v1450_v36, %v234_v45 }
  0x2c   :  { %1073 = vmatpush3.bf16.msra.mxu1 %v1361_v43  ;;  %1145 = vmatpush3.bf16.msra.mxu0 %v1361_v43  ;;  %v249_v24 = vsub.f32 %v1470_v58, %v248_v15 }
  0x2d   :  { %1074 = vmatprep.subr.bf16.mxu1 %v1245_v0  ;;  %1146 = vmatprep.subr.bf16.mxu0 %v1245_v0  ;;  %v236_v19 = vand.u32 4294901760, %v235_v12 }
  0x2e   :  { %v250_v47 = vand.u32 4294901760, %v249_v24 }
  0x30   :  { %1076 = vmatpush3.bf16.msra.mxu1 %v1386_v55  ;;  %1148 = vmatpush3.bf16.msra.mxu0 %v1386_v55 }
  0x31   :  { %1077 = vmatprep.subr.bf16.mxu1 %v1245_v0  ;;  %1149 = vmatprep.subr.bf16.mxu0 %v1245_v0 }
  0x34   :  { %1079 = vmatpush3.bf16.msra.mxu1 %v1407_v3  ;;  %1151 = vmatpush3.bf16.msra.mxu0 %v1407_v3 }
  0x35   :  { %1080 = vmatprep.subr.bf16.mxu1 %v1245_v0  ;;  %1152 = vmatprep.subr.bf16.mxu0 %v1245_v0 }
  0x37   :  { %879 = vmatmul.mubr.f32.vlgmr.msra.gmra.mrb[0].mxu1 %v134_v10  ;;  %984 = vmatmul.mubr.f32.vlgmr.msra.gmra.mrb[0].mxu0 %v132_v53  ;;  %v1159_v53 = vpack.c.bf16 %v178_v2, %v171_v63  ;;  %v214_v63 = vsub.f32 %v1429_v21, %v213_v56  ;;  %v227_v2 = vand.u32 4294901760, %v1445_v30  ;;  %v1093_v10 = vpack.c.bf16 %v208_v5, %v201_v62 }
  0x38   :  { %1082 = vmatpush3.bf16.msra.mxu1 %v1081_v16  ;;  %1154 = vmatpush3.bf16.msra.mxu0 %v1153_v9  ;;  %v241_v9 = vand.u32 4294901760, %v1465_v44  ;;  %v1168_v16 = vpack.c.bf16 %v220_v38, %v213_v56 }
  0x39   :  { %1083 = vmatprep.subr.bf16.mxu1 %v1245_v0  ;;  %1155 = vmatprep.subr.bf16.mxu0 %v1245_v0  ;;  %v215_v51 = vand.u32 4294901760, %v214_v63  ;;  %v228_v52 = vsub.f32 %v1445_v30, %v227_v2  ;;  %v1171_v27 = vpack.c.bf16 %v234_v45, %v227_v2 }
  0x3a   :  { %913 = vmatprep.mubr.msk.f32.mxu1 %vm1246_vm0, %v1247_v1  ;;  %1018 = vmatprep.mubr.msk.f32.mxu0 %vm1246_vm0, %v1247_v1  ;;  %v1174_v35 = vpack.c.bf16 %v248_v15, %v241_v9 }
  0x3b   :  { %v229_v17 = vand.u32 4294901760, %v228_v52  ;;  %v1096_v18 = vpack.c.bf16 %v222_v11, %v215_v51 }
  0x3c   :  { %1085 = vmatpush3.bf16.msra.mxu1 %v1084_v28  ;;  %1157 = vmatpush3.bf16.msra.mxu0 %v1156_v23  ;;  %v242_v23 = vsub.f32 %v1465_v44, %v241_v9 }
  0x3d   :  { %1086 = vmatprep.subr.bf16.mxu1 %v1245_v0  ;;  %1158 = vmatprep.subr.bf16.mxu0 %v1245_v0  ;;  %v1099_v26 = vpack.c.bf16 %v236_v19, %v229_v17 }
  0x3e   :  { %v243_v28 = vand.u32 4294901760, %v242_v23 }
  0x40   :  { %1088 = vmatpush3.bf16.msra.mxu1 %v1087_v48  ;;  %1160 = vmatpush3.bf16.msra.mxu0 %v1159_v53  ;;  %v1102_v29 = vpack.c.bf16 %v250_v47, %v243_v28  ;;  %v1105_v48 = vpack.c.bf16 %v1333_v33, %v1329_v31  ;;  %v1108_v53 = vpack.c.bf16 %v1349_v40, %v1347_v39  ;;  %v692_v33 = vlaneseq }
  0x41   :  { %1089 = vmatprep.subr.bf16.mxu1 %v1245_v0  ;;  %1161 = vmatprep.subr.bf16.mxu0 %v1245_v0  ;;  %v1111_v31 = vpack.c.bf16 %v1374_v50, %v1372_v49 }
  0x42   :  { %v693_v40 = vand.u32 127, %v692_v33 }
  0x44   :  { %1091 = vmatpush3.bf16.msra.mxu1 %v1090_v4  ;;  %1163 = vmatpush3.bf16.msra.mxu0 %v1162_v61  ;;  %vm707_vm2 = vcmp.lt.s32.totalorder %v693_v40, 16 }
  0x45   :  { %1092 = vmatprep.subr.bf16.mxu1 %v1245_v0  ;;  %1164 = vmatprep.subr.bf16.mxu0 %v1245_v0 }
  0x48   :  { %1094 = vmatpush3.bf16.msra.mxu1 %v1093_v10  ;;  %1166 = vmatpush3.bf16.msra.mxu0 %v1165_v46 }
  0x49   :  { %1095 = vmatprep.subr.bf16.mxu1 %v1245_v0  ;;  %1167 = vmatprep.subr.bf16.mxu0 %v1245_v0 }
  0x4c   :  { %1097 = vmatpush3.bf16.msra.mxu1 %v1096_v18  ;;  %1169 = vmatpush3.bf16.msra.mxu0 %v1168_v16 }
  0x4d   :  { %1098 = vmatprep.subr.bf16.mxu1 %v1245_v0  ;;  %1170 = vmatprep.subr.bf16.mxu0 %v1245_v0 }
  0x50   :  { %1100 = vmatpush3.bf16.msra.mxu1 %v1099_v26  ;;  %1172 = vmatpush3.bf16.msra.mxu0 %v1171_v27 }
  0x51   :  { %1101 = vmatprep.subr.bf16.mxu1 %v1245_v0  ;;  %1173 = vmatprep.subr.bf16.mxu0 %v1245_v0 }
  0x54   :  { %1103 = vmatpush3.bf16.msra.mxu1 %v1102_v29  ;;  %1175 = vmatpush3.bf16.msra.mxu0 %v1174_v35 }
  0x55   :  { %1104 = vmatprep.subr.bf16.mxu1 %v1245_v0  ;;  %1176 = vmatprep.subr.bf16.mxu0 %v1245_v0 }
  0x57   :  { %914 = vmatmul.mubr.f32.vlgmr.msra.gmra.mrb[0].mxu1 %v1331_v32  ;;  %1019 = vmatmul.mubr.f32.vlgmr.msra.gmra.mrb[0].mxu0 %v1331_v32 }
  0x58   :  { %1106 = vmatpush3.bf16.msra.mxu1 %v1105_v48  ;;  %1178 = vmatpush3.bf16.msra.mxu0 %v1293_v13  ;;  %v1114_v13 = vpack.c.bf16 %v1395_v60, %v1393_v59 }
  0x59   :  { %1107 = vmatprep.subr.bf16.mxu1 %v1245_v0  ;;  %1179 = vmatprep.subr.bf16.mxu0 %v1245_v0 }
  0x5a   :  { %948 = vmatprep.mubr.msk.f32.mxu1 %vm1246_vm0, %v1247_v1  ;;  %1053 = vmatprep.mubr.msk.f32.mxu0 %vm1246_vm0, %v1247_v1  ;;  %v1117_v1 = vpack.c.bf16 %v1416_v8, %v1413_v7 }
  0x5c   :  { %1109 = vmatpush3.bf16.msra.mxu1 %v1108_v53  ;;  %1181 = vmatpush3.bf16.msra.mxu0 %v1297_v14  ;;  %v1120_v14 = vpack.c.bf16 %v1434_v22, %v1429_v21 }
  0x5d   :  { %1110 = vmatprep.subr.bf16.mxu1 %v1245_v0  ;;  %1182 = vmatprep.subr.bf16.mxu0 %v1245_v0 }
  0x60   :  { %1112 = vmatpush3.bf16.msra.mxu1 %v1111_v31  ;;  %1184 = vmatpush3.bf16.msra.mxu0 %v1306_v20  ;;  %v1123_v20 = vpack.c.bf16 %v1450_v36, %v1445_v30 }
  0x61   :  { %1113 = vmatprep.subr.bf16.mxu1 %v1245_v0  ;;  %1185 = vmatprep.subr.bf16.mxu0 %v1245_v0 }
  0x64   :  { %1115 = vmatpush3.bf16.msra.mxu1 %v1114_v13  ;;  %1187 = vmatpush3.bf16.msra.mxu0 %v1316_v25  ;;  %v1126_v25 = vpack.c.bf16 %v1470_v58, %v1465_v44 }
  0x65   :  { %1116 = vmatprep.subr.bf16.mxu1 %v1245_v0  ;;  %1188 = vmatprep.subr.bf16.mxu0 %v1245_v0 }
  0x68   :  { %1118 = vmatpush3.bf16.msra.mxu1 %v1117_v1  ;;  %1190 = vmatpush3.bf16.msra.mxu0 %v1337_v34  ;;  %v742_v34 = vld [vmem:[%s1557_s3] ss:$0 sm:$0xff] }
  0x69   :  { %1119 = vmatprep.subr.bf16.mxu1 %v1245_v0  ;;  %1191 = vmatprep.subr.bf16.mxu0 %v1245_v0 }
  0x6c   :  { %1121 = vmatpush3.bf16.msra.mxu1 %v1120_v14  ;;  %1193 = vmatpush3.bf16.msra.mxu0 %v1361_v43  ;;  %v695_v43 = vshrl.u32 %v692_v33, 7 }
  0x6d   :  { %1122 = vmatprep.subr.bf16.mxu1 %v1245_v0  ;;  %1194 = vmatprep.subr.bf16.mxu0 %v1245_v0 }
  0x6e   :  { %vm706_vm5 = vcmp.ne.s32.totalorder %v693_v40, %v695_v43 }
  0x70   :  { %1124 = vmatpush3.bf16.msra.mxu1 %v1123_v20  ;;  %1196 = vmatpush3.bf16.msra.mxu0 %v1386_v55 }
  0x71   :  { %1125 = vmatprep.subr.bf16.mxu1 %v1245_v0  ;;  %1197 = vmatprep.subr.bf16.mxu0 %v1245_v0 }
  0x74   :  { %1127 = vmatpush3.bf16.msra.mxu1 %v1126_v25  ;;  %1199 = vmatpush3.bf16.msra.mxu0 %v1407_v3 }
  0x77   :  { %949 = vmatmul.mubr.f32.vlgmr.msra.gmra.mrb[0].mxu1 %v1353_v42  ;;  %1054 = vmatmul.mubr.f32.vlgmr.msra.gmra.mrb[0].mxu0 %v1331_v32 }
  0x95   :  { %v700_v39 = vpop.permute.xlu0 %699 }
  0x96   :  { %vm705_vm1 = vcmp.eq.s32.totalorder %v700_v39, %v742_v34 }
  0x97   :  { %vm709_vm4 = vmxor %vm705_vm1, %vm1249_vm3 }
  0x98   :  { %vm712_vm6 = vmand %vm709_vm4, %vm707_vm2 }
  0x99   :  { %vm1543_vm7 = vmand %vm705_vm1, %vm706_vm5 }
 0x14a   :  { %v391_v0 = vpop.f32.mrb[0].mxu1  ;;  %v686_v49 = vpop.f32.mrb[0].mxu0 }
 0x14b   :  { %v1200_v32 = vadd.f32 %v686_v49, %v391_v0  ;;  %v950_v50 = vpop.f32.mrb[1].mxu1  ;;  %v1055_v55 = vpop.f32.mrb[1].mxu0 }
 0x14d   :  { %v714_v59 = vsel %vm1543_vm7, %v1200_v32, -inf  ;;  %v713_v60 = vsel %vm712_vm6, %v1200_v32, -inf  ;;  %v724_v30 = vsub.f32 1.0, %v1200_v32 }
 0x14e   :  { %717 = vmax.xlane.f32.xlu0 %v714_v59  ;;  %715 = vmax.xlane.f32.xlu1 %v713_v60 }
 0x1db   :  { %v718_v3 = vpop.xlane.xlu0 %717  ;;  %v716_v7 = vpop.xlane.xlu1 %715 }
 0x1dc   :  { %v720_v8 = vmax.f32 %v718_v3, 0.6  ;;  %v719_v21 = vadd.f32 0.1, %v716_v7  ;;  %vm731_vm12 = vcmp.gt.f32.partialorder %v718_v3, -inf }
 0x1de   :  { %v743_v22 = vadd.f32 -0.1, %v720_v8  ;;  %vm722_vm8 = vcmp.lt.f32.partialorder %v1200_v32, %v719_v21 }
 0x1df   :  { %vm723_vm9 = vmand %vm1543_vm7, %vm722_vm8 }
 0x1e0   :  { %vm726_vm10 = vcmp.gt.f32.partialorder %v713_v60, %v743_v22  ;;  %v725_v36 = vsel %vm723_vm9, %v724_v30, 0.0 }
 0x1e1   :  { %v727_v54 = vsel %vm726_vm10, %v713_v60, 0.0 }
 0x1e2   :  { %v728_v56 = vadd.f32 %v727_v54, %v725_v36 }
 0x1e4   :  { %729 = vadd.xlane.f32.xlu1 %v728_v56 }
 0x271   :  { %v730_v37 = vpop.xlane.xlu1 %729 }
 0x272   :  { %v734_v41 = vsel %vm731_vm12, %v730_v37, 0.0 }
 0x273   :  { %736 = vst.msk [vmem:[%s1558_s4] sm:$0xff] %vm735_vm11, %v734_v41 }
 0x274   :  { %741 = vsyncpa [#allocation3], 1 }

</bundles_post_ra>
